<compile_context>
chip_gen: v6e
topology: v6e:2x2x1
jax: 0.10.0
libtpu: 0.0.40
codegen_flags: <defaults>
</compile_context>

<pallas_src>
import jax
import jax.numpy as jnp
from jax import lax
from jax.experimental import pallas as pl
from jax.experimental.pallas import tpu as pltpu

_BLOCK_BYTES = 4 * 1024 * 1024   # target per-input block size per grid step
_VMEM_LIMIT = 48 * 1024 * 1024   # scoped VMEM cap: >> 16 MiB pipeline + temps,
                                 # still well under v7x's 64 MiB physical VMEM
_LANE = 128
_EPS = 1e-5


def _round_up(x, m):
    return ((x + m - 1) // m) * m


def _cdiv(a, b):
    return -(-a // b)


def _sublane_multiple(dtype):
    # f32 -> 8, bf16/f16 -> 16, int8/bool/fp8 -> 32 (sublane packing).
    return {4: 8, 2: 16, 1: 32}.get(jnp.dtype(dtype).itemsize, 8)


def _make_kernel(hw_total, hw_tile, hwb_half, need_mask):
    """Builds the kernel with all tiling parameters closed over statically."""

    def kernel(pred_ref, tgt_ref, inter_ref, psq_ref, tsq_ref):
        c = pl.program_id(1)   # core-split index along the spatial axis
        h = pl.program_id(2)   # spatial tile index within this core's half

        # Output blocks stay resident across the (innermost, "arbitrary") h
        # axis -> use them directly as accumulators: zero at the first tile.
        @pl.when(h == 0)
        def _init():
            inter_ref[...] = jnp.zeros_like(inter_ref)
            psq_ref[...] = jnp.zeros_like(psq_ref)
            tsq_ref[...] = jnp.zeros_like(tsq_ref)

        def accumulate(p, t):
            # Per-sample (row) partial sums for this spatial tile, f32 accum.
            inter_ref[0, :, :] = inter_ref[0, :, :] + jnp.sum(
                p * t, axis=-1, keepdims=True)
            psq_ref[0, :, :] = psq_ref[0, :, :] + jnp.sum(
                p * p, axis=-1, keepdims=True)
            tsq_ref[0, :, :] = tsq_ref[0, :, :] + jnp.sum(
                t * t, axis=-1, keepdims=True)

        if need_mask:
            lb = c * hwb_half + h          # logical spatial block index
            col0 = lb * hw_tile            # first column covered by this tile

            @pl.when(col0 + hw_tile <= hw_total)
            def _interior():               # fully in-bounds tile: no masking
                accumulate(pred_ref[...].astype(jnp.float32),
                           tgt_ref[...].astype(jnp.float32))

            @pl.when(col0 + hw_tile > hw_total)
            def _boundary():               # boundary / overflow tile: mask
                col = col0 + lax.broadcasted_iota(jnp.int32, pred_ref.shape, 1)
                valid = col < hw_total
                p = jnp.where(valid, pred_ref[...].astype(jnp.float32), 0.0)
                t = jnp.where(valid, tgt_ref[...].astype(jnp.float32), 0.0)
                accumulate(p, t)
        else:
            accumulate(pred_ref[...].astype(jnp.float32),
                       tgt_ref[...].astype(jnp.float32))

    return kernel


@jax.jit
def dice_loss(pred, target):
    """pred, target: (N, H, W) arrays. Returns scalar float32 loss."""
    assert pred.shape == target.shape and pred.ndim == 3
    N, H, W = pred.shape
    HW = H * W

    # Free reshapes only — no pad, no cast, no extra HBM pass.
    p = pred.reshape(N, HW)
    t = target.reshape(N, HW)

    itemsize = max(jnp.dtype(p.dtype).itemsize, jnp.dtype(t.dtype).itemsize)
    base_tn = max(_sublane_multiple(p.dtype), _sublane_multiple(t.dtype))

    # Batch tile: full batch as a single block when N is tiny; otherwise a
    # sublane-aligned tile grown toward the block-byte budget when HW is small.
    if N <= base_tn:
        tn = N
    else:
        rows_budget = max(1, _BLOCK_BYTES // (HW * itemsize))
        tn = min(_round_up(N, base_tn),
                 max(base_tn, rows_budget // base_tn * base_tn))
    nb = _cdiv(N, tn)

    # Spatial tile: ~_BLOCK_BYTES per input block; last-tile waste < 128 cols.
    cap = max(_LANE, (_BLOCK_BYTES // (tn * itemsize)) // _LANE * _LANE)
    if HW <= cap:
        hw_tile = HW                    # one full-extent tile, no masking
    else:
        n_tiles = _cdiv(HW, cap)
        hw_tile = _round_up(_cdiv(HW, n_tiles), _LANE)
    hwb_total = _cdiv(HW, hw_tile)

    # Split the spatial reduction across 2 "parallel" slots (v7x megacore) when
    # there is more than one spatial tile; v5e/v6e just run both halves.
    nc = 2 if hwb_total >= 2 else 1
    hwb_half = _cdiv(hwb_total, nc)
    need_mask = nc * hwb_half * hw_tile > HW

    if nc * hwb_half > hwb_total:
        # Odd tile count: core 1's last logical tile is clamped to stay in
        # bounds and fully masked inside the kernel.
        def in_map(n, c, h):
            return (n, jnp.minimum(c * hwb_half + h, hwb_total - 1))
    else:
        def in_map(n, c, h):
            return (n, c * hwb_half + h)

    def out_map(n, c, h):
        return (c, n, 0)

    kernel = _make_kernel(HW, hw_tile, hwb_half, need_mask)

    out_shape = tuple(
        jax.ShapeDtypeStruct((nc, nb * tn, 1), jnp.float32) for _ in range(3))
    out_specs = tuple(pl.BlockSpec((1, tn, 1), out_map) for _ in range(3))

    inter_p, psq_p, tsq_p = pl.pallas_call(
        kernel,
        out_shape=out_shape,
        grid_spec=pltpu.PrefetchScalarGridSpec(
            num_scalar_prefetch=0,
            grid=(nb, nc, hwb_half),
            in_specs=[
                pl.BlockSpec((tn, hw_tile), in_map),
                pl.BlockSpec((tn, hw_tile), in_map),
            ],
            out_specs=out_specs,
        ),
        compiler_params=pltpu.CompilerParams(
            dimension_semantics=("parallel", "parallel", "arbitrary"),
            vmem_limit_bytes=_VMEM_LIMIT,
        ),
    )(p, t)

    # Combine per-core partial sums; keep only the real (unpadded) samples.
    # NOTE: the [:N] slice must stay — rows >= N come from remainder blocks.
    inter = jnp.sum(inter_p[:, :N, 0], axis=0)
    psq = jnp.sum(psq_p[:, :N, 0], axis=0)
    tsq = jnp.sum(tsq_p[:, :N, 0], axis=0)
    dice = 2.0 * inter / (psq + tsq + _EPS)
    return jnp.mean(1.0 - dice)


def dice_loss_ref(pred, target):
    """Pure-JAX reference matching the PyTorch module exactly."""
    inter = (pred * target).sum(axis=1).sum(axis=1)
    denom = ((pred ** 2).sum(axis=1).sum(axis=1)
             + (target ** 2).sum(axis=1).sum(axis=1) + 1e-5)
    dice = 2.0 * inter / denom
    return (1.0 - dice).mean()


if __name__ == "__main__":
    key = jax.random.PRNGKey(0)
    k1, k2 = jax.random.split(key)
    N, H, W = 2, 16, 16
    # pred ~ sigmoid-like probabilities, target ~ binary mask
    pred = jax.nn.sigmoid(jax.random.normal(k1, (N, H, W), dtype=jnp.float32))
    target = (jax.random.uniform(k2, (N, H, W)) > 0.5).astype(jnp.float32)

    loss = dice_loss(pred, target)
    jax.block_until_ready(loss)

    ref = dice_loss_ref(pred, target)
    assert jnp.allclose(loss, ref, rtol=1e-5, atol=1e-6), (loss, ref)

    print("KERNEL_OK")
</pallas_src>

<mosaic_0001>
module attributes {stable_mosaic.version = 11 : i64} {
  func.func @kernel(%arg0: i32, %arg1: i32, %arg2: i32, %arg3: memref<2x256xf32, #tpu.memory_space<vmem>>, %arg4: memref<2x256xf32, #tpu.memory_space<vmem>>, %arg5: memref<1x2x1xf32, #tpu.memory_space<vmem>>, %arg6: memref<1x2x1xf32, #tpu.memory_space<vmem>>, %arg7: memref<1x2x1xf32, #tpu.memory_space<vmem>>) attributes {dimension_semantics = [#tpu.dimension_semantics<parallel>, #tpu.dimension_semantics<parallel>, #tpu.dimension_semantics<arbitrary>], iteration_bounds = array<i64: 1, 1, 1>, scalar_prefetch = 0 : i64, scratch_operands = 0 : i64, tpu.core_type = #tpu.core_type<tc>, window_params = [{transform_indices = @transform_0, window_bounds = array<i64: 2, 256>}, {transform_indices = @transform_1, window_bounds = array<i64: 2, 256>}, {transform_indices = @transform_2, window_bounds = array<i64: 1, 2, 1>}, {transform_indices = @transform_3, window_bounds = array<i64: 1, 2, 1>}, {transform_indices = @transform_4, window_bounds = array<i64: 1, 2, 1>}]} {
    %c0_i32 = arith.constant 0 : i32
    %0 = arith.cmpi eq, %arg2, %c0_i32 : i32
    %1 = arith.extui %0 : i1 to i32
    %c0_i32_0 = arith.constant 0 : i32
    %2 = arith.cmpi ne, %1, %c0_i32_0 : i32
    scf.if %2 {
      %cst_24 = arith.constant 0.000000e+00 : f32
      %32 = vector.broadcast %cst_24 : f32 to vector<1x2x1xf32>
      %c0_25 = arith.constant 0 : index
      %c0_26 = arith.constant 0 : index
      %c0_27 = arith.constant 0 : index
      %33 = vector.load %arg5[%c0_25, %c0_26, %c0_27] : memref<1x2x1xf32, #tpu.memory_space<vmem>>, vector<1x2x1xf32>
      tpu.vector_store %arg5[%c0_25, %c0_26, %c0_27], %32 {strides = array<i32>} : memref<1x2x1xf32, #tpu.memory_space<vmem>>, vector<1x2x1xf32>,
      %cst_28 = arith.constant 0.000000e+00 : f32
      %34 = vector.broadcast %cst_28 : f32 to vector<1x2x1xf32>
      %c0_29 = arith.constant 0 : index
      %c0_30 = arith.constant 0 : index
      %c0_31 = arith.constant 0 : index
      %35 = vector.load %arg6[%c0_29, %c0_30, %c0_31] : memref<1x2x1xf32, #tpu.memory_space<vmem>>, vector<1x2x1xf32>
      tpu.vector_store %arg6[%c0_29, %c0_30, %c0_31], %34 {strides = array<i32>} : memref<1x2x1xf32, #tpu.memory_space<vmem>>, vector<1x2x1xf32>,
      %cst_32 = arith.constant 0.000000e+00 : f32
      %36 = vector.broadcast %cst_32 : f32 to vector<1x2x1xf32>
      %c0_33 = arith.constant 0 : index
      %c0_34 = arith.constant 0 : index
      %c0_35 = arith.constant 0 : index
      %37 = vector.load %arg7[%c0_33, %c0_34, %c0_35] : memref<1x2x1xf32, #tpu.memory_space<vmem>>, vector<1x2x1xf32>
      tpu.vector_store %arg7[%c0_33, %c0_34, %c0_35], %36 {strides = array<i32>} : memref<1x2x1xf32, #tpu.memory_space<vmem>>, vector<1x2x1xf32>,
    } else {
    }
    %c0 = arith.constant 0 : index
    %c0_1 = arith.constant 0 : index
    %3 = vector.load %arg3[%c0, %c0_1] : memref<2x256xf32, #tpu.memory_space<vmem>>, vector<2x256xf32>
    %c0_2 = arith.constant 0 : index
    %c0_3 = arith.constant 0 : index
    %4 = vector.load %arg4[%c0_2, %c0_3] : memref<2x256xf32, #tpu.memory_space<vmem>>, vector<2x256xf32>
    %c0_4 = arith.constant 0 : index
    %c0_5 = arith.constant 0 : index
    %c0_6 = arith.constant 0 : index
    %5 = vector.load %arg5[%c0_4, %c0_5, %c0_6] : memref<1x2x1xf32, #tpu.memory_space<vmem>>, vector<1x2x1xf32>
    %6 = vector.shape_cast %5 : vector<1x2x1xf32> to vector<2x1xf32>
    %7 = arith.mulf %3, %4 : vector<2x256xf32>
    %cst = arith.constant dense<0.000000e+00> : vector<2xf32>
    %8 = vector.multi_reduction <add>, %7, %cst [1] : vector<2x256xf32> to vector<2xf32>
    %9 = vector.shape_cast %8 : vector<2xf32> to vector<2x1xf32>
    %10 = arith.addf %6, %9 : vector<2x1xf32>
    %c0_7 = arith.constant 0 : index
    %c0_8 = arith.constant 0 : index
    %c0_9 = arith.constant 0 : index
    %11 = vector.load %arg5[%c0_7, %c0_8, %c0_9] : memref<1x2x1xf32, #tpu.memory_space<vmem>>, vector<1x2x1xf32>
    %12 = vector.shape_cast %11 : vector<1x2x1xf32> to vector<2x1xf32>
    %13 = vector.shape_cast %10 : vector<2x1xf32> to vector<1x2x1xf32>
    tpu.vector_store %arg5[%c0_7, %c0_8, %c0_9], %13 {strides = array<i32>} : memref<1x2x1xf32, #tpu.memory_space<vmem>>, vector<1x2x1xf32>,
    %c0_10 = arith.constant 0 : index
    %c0_11 = arith.constant 0 : index
    %c0_12 = arith.constant 0 : index
    %14 = vector.load %arg6[%c0_10, %c0_11, %c0_12] : memref<1x2x1xf32, #tpu.memory_space<vmem>>, vector<1x2x1xf32>
    %15 = vector.shape_cast %14 : vector<1x2x1xf32> to vector<2x1xf32>
    %16 = arith.mulf %3, %3 : vector<2x256xf32>
    %cst_13 = arith.constant dense<0.000000e+00> : vector<2xf32>
    %17 = vector.multi_reduction <add>, %16, %cst_13 [1] : vector<2x256xf32> to vector<2xf32>
    %18 = vector.shape_cast %17 : vector<2xf32> to vector<2x1xf32>
    %19 = arith.addf %15, %18 : vector<2x1xf32>
    %c0_14 = arith.constant 0 : index
    %c0_15 = arith.constant 0 : index
    %c0_16 = arith.constant 0 : index
    %20 = vector.load %arg6[%c0_14, %c0_15, %c0_16] : memref<1x2x1xf32, #tpu.memory_space<vmem>>, vector<1x2x1xf32>
    %21 = vector.shape_cast %20 : vector<1x2x1xf32> to vector<2x1xf32>
    %22 = vector.shape_cast %19 : vector<2x1xf32> to vector<1x2x1xf32>
    tpu.vector_store %arg6[%c0_14, %c0_15, %c0_16], %22 {strides = array<i32>} : memref<1x2x1xf32, #tpu.memory_space<vmem>>, vector<1x2x1xf32>,
    %c0_17 = arith.constant 0 : index
    %c0_18 = arith.constant 0 : index
    %c0_19 = arith.constant 0 : index
    %23 = vector.load %arg7[%c0_17, %c0_18, %c0_19] : memref<1x2x1xf32, #tpu.memory_space<vmem>>, vector<1x2x1xf32>
    %24 = vector.shape_cast %23 : vector<1x2x1xf32> to vector<2x1xf32>
    %25 = arith.mulf %4, %4 : vector<2x256xf32>
    %cst_20 = arith.constant dense<0.000000e+00> : vector<2xf32>
    %26 = vector.multi_reduction <add>, %25, %cst_20 [1] : vector<2x256xf32> to vector<2xf32>
    %27 = vector.shape_cast %26 : vector<2xf32> to vector<2x1xf32>
    %28 = arith.addf %24, %27 : vector<2x1xf32>
    %c0_21 = arith.constant 0 : index
    %c0_22 = arith.constant 0 : index
    %c0_23 = arith.constant 0 : index
    %29 = vector.load %arg7[%c0_21, %c0_22, %c0_23] : memref<1x2x1xf32, #tpu.memory_space<vmem>>, vector<1x2x1xf32>
    %30 = vector.shape_cast %29 : vector<1x2x1xf32> to vector<2x1xf32>
    %31 = vector.shape_cast %28 : vector<2x1xf32> to vector<1x2x1xf32>
    tpu.vector_store %arg7[%c0_21, %c0_22, %c0_23], %31 {strides = array<i32>} : memref<1x2x1xf32, #tpu.memory_space<vmem>>, vector<1x2x1xf32>,
    return
  }
  func.func @transform_0(%arg0: i32, %arg1: i32, %arg2: i32) -> (i32, i32) {
    %c1_i32 = arith.constant 1 : i32
    %0 = arith.muli %arg1, %c1_i32 : i32
    %1 = arith.addi %0, %arg2 : i32
    %c0_i32 = arith.constant 0 : i32
    return %arg0, %1 : i32, i32
  }
  func.func @transform_1(%arg0: i32, %arg1: i32, %arg2: i32) -> (i32, i32) {
    %c1_i32 = arith.constant 1 : i32
    %0 = arith.muli %arg1, %c1_i32 : i32
    %1 = arith.addi %0, %arg2 : i32
    %c0_i32 = arith.constant 0 : i32
    return %arg0, %1 : i32, i32
  }
  func.func @transform_2(%arg0: i32, %arg1: i32, %arg2: i32) -> (i32, i32, i32) {
    %c0_i32 = arith.constant 0 : i32
    %c0_i32_0 = arith.constant 0 : i32
    return %arg1, %arg0, %c0_i32 : i32, i32, i32
  }
  func.func @transform_3(%arg0: i32, %arg1: i32, %arg2: i32) -> (i32, i32, i32) {
    %c0_i32 = arith.constant 0 : i32
    %c0_i32_0 = arith.constant 0 : i32
    return %arg1, %arg0, %c0_i32 : i32, i32, i32
  }
  func.func @transform_4(%arg0: i32, %arg1: i32, %arg2: i32) -> (i32, i32, i32) {
    %c0_i32 = arith.constant 0 : i32
    %c0_i32_0 = arith.constant 0 : i32
    return %arg1, %arg0, %c0_i32 : i32, i32, i32
  }
}

</mosaic_0001>

<bundles_post_ra>
// kernel: dice_loss.1
= control target key start
LH: loop header
LB: loop body
LE: loop exit
PB: predicated region body
PF: predicated region fallthrough
CT: control target
= control target key end

     0   :  { %v74_v0 = vlaneseq  ;;  %vm62_vm0 = vcmask 1024   ;;  %v156_v3 = vmov 1983009808   ;;  %v157_v6 = vmov 0.0   ;;  %s222_s0 = inlined_call_operand.vmem [shape: f32[2,256], index: 0, kind: input, shape index: {}]   ;;  %s223_s1 = inlined_call_operand.vmem [shape: f32[2,256], index: 1, kind: input, shape index: {}]   ;;  %s224_s2 = inlined_call_operand.vmem [shape: f32[1,2,1], index: 2, kind: output, shape index: {0}]   ;;  %s225_s4 = inlined_call_operand.vmem [shape: f32[1,2,1], index: 4, kind: output, shape index: {2}]   ;;  %s226_s3 = inlined_call_operand.vmem [shape: f32[1,2,1], index: 3, kind: output, shape index: {1}]  }
   0x1   :  { %v66_v1 = vld [vmem:[%s222_s0] sm:$0xf]  ;;  %v72_v4 = vunpack.c.l.s4 %v156_v3  ;;  %63 = vst.msk [vmem:[%s224_s2] sm:$0x3] %vm62_vm0, %v157_v6  ;;  %vm81_vm1 = vcmask 1041408  }
   0x2   :  { %v67_v2 = vld [vmem:[%s223_s1] sm:$0xf]  ;;  %v75_v5 = vshrl.u32 %v74_v0, 7  ;;  %v91_v10 = vmul.f32 %v66_v1, %v66_v1  ;;  %65 = vst.msk [vmem:[%s225_s4] sm:$0x3] %vm62_vm0, %v157_v6 }
   0x3   :  { %v69_v7 = vmul.f32 %v67_v2, %v66_v1  ;;  %v73_v8 = vunpack.c.0.s8 %v72_v4  ;;  %v111_v9 = vmul.f32 %v67_v2, %v67_v2  ;;  %64 = vst.msk [vmem:[%s226_s3] sm:$0x3] %vm62_vm0, %v157_v6 }
   0x5   :  { %v76_v11 = vsub.s32 %v73_v8, %v75_v5 }
   0x7   :  { %v77_v12 = vrot.slane %v69_v7, %v76_v11  ;;  %v119_v13 = vrot.slane %v111_v9, %v76_v11  ;;  %v99_v14 = vrot.slane %v91_v10, %v76_v11 }
   0x8   :  { %v68_v27 = vld [vmem:[%s224_s2] sm:$0x3] }
   0x9   :  { %v78_v15 = vcombine.high %v77_v12, %v77_v12  ;;  %v82_v16 = vsel %vm81_vm1, %v77_v12, 0.0  ;;  %v120_v17 = vcombine.high %v119_v13, %v119_v13  ;;  %v123_v18 = vsel %vm81_vm1, %v119_v13, 0.0  ;;  %v110_v28 = vld [vmem:[%s225_s4] sm:$0x3] }
   0xa   :  { %v100_v19 = vcombine.high %v99_v14, %v99_v14  ;;  %v103_v22 = vsel %vm81_vm1, %v99_v14, 0.0  ;;  %v90_v33 = vld [vmem:[%s226_s3] sm:$0x3] }
   0xb   :  { %v83_v20 = vsel %vm81_vm1, %v78_v15, 0.0  ;;  %v124_v21 = vsel %vm81_vm1, %v120_v17, 0.0 }
   0xc   :  { %v84_v23 = vadd.f32 %v83_v20, %v82_v16  ;;  %v125_v24 = vadd.f32 %v124_v21, %v123_v18  ;;  %v104_v25 = vsel %vm81_vm1, %v100_v19, 0.0 }
   0xd   :  { %v105_v26 = vadd.f32 %v104_v25, %v103_v22 }
   0xe   :  { %85 = vadd.xlane.f32.xlu0 %v84_v23  ;;  %126 = vadd.xlane.f32.xlu1 %v125_v24 }
  0x12   :  { %106 = vadd.xlane.f32.xlu0 %v105_v26 }
  0x97   :  { %v86_v29 = vpop.xlane.xlu0 %85  ;;  %v127_v30 = vpop.xlane.xlu1 %126 }
  0x98   :  { %v87_v31 = vadd.f32 %v86_v29, %v68_v27  ;;  %v128_v32 = vadd.f32 %v127_v30, %v110_v28 }
  0x9a   :  { %89 = vst.msk [vmem:[%s224_s2] sm:$0x3] %vm62_vm0, %v87_v31  ;;  %129 = vst.msk [vmem:[%s225_s4] sm:$0x3] %vm62_vm0, %v128_v32 }
  0x9b   :  { %v107_v34 = vpop.xlane.xlu0 %106 }
  0x9c   :  { %v108_v35 = vadd.f32 %v107_v34, %v90_v33 }
  0x9e   :  { %109 = vst.msk [vmem:[%s226_s3] sm:$0x3] %vm62_vm0, %v108_v35 }

</bundles_post_ra>
